<compile_context>
chip_gen: v7x
topology: tpu7x:2x2x1
jax: 0.10.0
libtpu: 0.0.40
codegen_flags: <defaults>
</compile_context>

<pallas_src>
import functools

import jax
import jax.numpy as jnp
from jax.experimental import pallas as pl
from jax.experimental.pallas import tpu as pltpu


def _round_up(v, m):
    return ((v + m - 1) // m) * m


def _pick_tile(dim_p, want):
    """Largest multiple of 128 <= want that divides dim_p (dim_p is a multiple of 128)."""
    want = max(128, min(int(want), dim_p))
    t = (want // 128) * 128
    while t > 128 and dim_p % t != 0:
        t -= 128
    return t


def _fc_bn_relu_kernel(*refs, eps, inv_batch, k_tile, x_resident, has_drop,
                       has_scratch):
    # unpack: inputs..., output, [scratch]
    x_ref, w_ref, g_ref, beta_ref = refs[:4]
    idx = 4
    dmask_ref = None
    if has_drop:
        dmask_ref = refs[idx]
        idx += 1
    o_ref = refs[idx]
    idx += 1
    acc_ref = refs[idx] if has_scratch else o_ref   # f32 accumulator target

    # grid position along the reduction axis -- computed ONCE at kernel top level
    # (never inside a pl.when body).
    k = pl.program_id(1)
    n_k = pl.num_programs(1)

    # ---- init accumulator on the first K step ------------------------------
    @pl.when(k == 0)
    def _():
        acc_ref[...] = jnp.zeros_like(acc_ref)

    # ---- Linear partial product on the MXU ---------------------------------
    if x_resident:
        # whole x lives in VMEM; take the current K slice (k_tile is a multiple
        # of 128, so the lane-dim slice is aligned).
        x_tile = x_ref[:, pl.ds(k * k_tile, k_tile)]
    else:
        x_tile = x_ref[...]

    # w tile is already [K_tile, N_tile] (wrapper transposed w once) -> native
    # MXU RHS layout, no per-step relayout.
    acc_ref[...] += jnp.dot(x_tile, w_ref[...],
                            preferred_element_type=jnp.float32)

    # ---- epilogue on the last K step: BN (batch stats) + ReLU [+ dropout] ---
    @pl.when(k == n_k - 1)
    def _():
        y = acc_ref[...].astype(jnp.float32)                  # [B, N_tile]
        # (Linear bias omitted: exactly cancelled by the mean subtraction.)
        mean = jnp.sum(y, axis=0, keepdims=True) * inv_batch  # [1, N]
        yc = y - mean
        # centered two-pass variance (well conditioned, matches PyTorch closely)
        var = jnp.sum(yc * yc, axis=0, keepdims=True) * inv_batch
        scale = g_ref[...] * jax.lax.rsqrt(var + eps)         # [1, N]
        z = jnp.maximum(yc * scale + beta_ref[...], 0.0)      # fused BN + ReLU
        if has_drop:
            # dmask holds 0 or 1/(1-p): inverted dropout, precomputed in wrapper
            z = z * dmask_ref[...]
        o_ref[...] = z.astype(o_ref.dtype)


def fully_connected_block(x, w, b, gamma, beta, *,
                          eps=1e-5, drop_rate=0.0, seed=0,
                          n_tile=256, k_tile=256,
                          mxu_dtype=None,
                          vmem_budget_bytes=16 * 1024 * 1024,
                          vmem_limit_bytes=None):
    """Fused Linear -> BatchNorm1d (training mode) -> ReLU -> [Dropout].

    x: [B, F_in]; w: [F_out, F_in] (PyTorch nn.Linear layout); b/gamma/beta: [F_out].
    The Linear bias `b` is accepted for API parity but unused (BN cancels it).
    mxu_dtype: optionally cast x/w (e.g. jnp.bfloat16) for MXU throughput;
               accumulation and BN/ReLU/dropout stay float32.
    vmem_budget_bytes: conservative working-set budget used to size tiles and to
               decide whether x stays VMEM-resident (default fits the 16 MiB
               default scoped VMEM on v5e; raise on v6e/v7x for bigger tiles).
    """
    B, f_in = x.shape
    f_out, f_in_w = w.shape
    assert f_in_w == f_in, "weight shape must be [F_out, F_in]"
    del b  # mathematically cancelled by BatchNorm's mean subtraction

    out_dtype = x.dtype
    if mxu_dtype is not None:
        x = x.astype(mxu_dtype)
        w = w.astype(mxu_dtype)
    in_isz = jnp.dtype(x.dtype).itemsize
    out_isz = jnp.dtype(out_dtype).itemsize

    has_drop = drop_rate > 0.0
    has_scratch = out_dtype != jnp.float32   # else accumulate directly in o_ref

    # ---- pad feature dims only to multiples of 128 -------------------------
    f_in_p = _round_up(f_in, 128)
    f_out_p = _round_up(f_out, 128)

    # ---- lane-dense tiles that divide the 128-padded dims ------------------
    k_tile = _pick_tile(f_in_p, k_tile)
    n_tile = _pick_tile(f_out_p, n_tile)
    # v7x megacore: make sure the "parallel" j axis has >= 2 tiles when possible
    if f_out_p // n_tile == 1 and f_out_p >= 256:
        half = f_out_p // 2
        n_tile = half if half % 128 == 0 else 128

    def _estimate_vmem(resident, kt, nt):
        s = 2 * B * (f_in_p if resident else kt) * in_isz  # x (double-buffered)
        s += 2 * kt * nt * in_isz                           # w tile
        s += 2 * 2 * nt * 4                                 # gamma + beta
        s += 2 * B * nt * out_isz                           # output tile
        if has_scratch:
            s += B * nt * 4                                 # f32 accumulator
        if has_drop:
            s += 2 * B * nt * 4                             # dropout mask tile
        return s

    # shrink tiles until the streamed-x working set fits the budget
    while _estimate_vmem(False, k_tile, n_tile) > vmem_budget_bytes:
        if k_tile >= n_tile and k_tile > 128:
            k_tile = _pick_tile(f_in_p, k_tile // 2)
        elif n_tile > 128:
            n_tile = _pick_tile(f_out_p, n_tile // 2)
        else:
            break

    # keep x resident across the whole grid if it fits (x is DMA'd exactly once)
    x_resident = _estimate_vmem(True, k_tile, n_tile) <= vmem_budget_bytes

    n_j = f_out_p // n_tile
    n_k = f_in_p // k_tile

    # ---- host-side layout prep ---------------------------------------------
    wt = w.T                                   # [F_in, F_out]: native MXU RHS
    if f_in_p != f_in:
        x = jnp.pad(x, ((0, 0), (0, f_in_p - f_in)))
    if f_in_p != f_in or f_out_p != f_out:
        wt = jnp.pad(wt, ((0, f_in_p - f_in), (0, f_out_p - f_out)))
    g2 = jnp.pad(gamma.astype(jnp.float32), (0, f_out_p - f_out)).reshape(1, f_out_p)
    b2 = jnp.pad(beta.astype(jnp.float32), (0, f_out_p - f_out)).reshape(1, f_out_p)

    args = [x, wt, g2, b2]
    in_specs = [
        (pl.BlockSpec((B, f_in_p), lambda j, k: (0, 0)) if x_resident
         else pl.BlockSpec((B, k_tile), lambda j, k: (0, k))),          # x
        pl.BlockSpec((k_tile, n_tile), lambda j, k: (k, j)),            # w^T
        pl.BlockSpec((1, n_tile), lambda j, k: (0, j)),                 # gamma
        pl.BlockSpec((1, n_tile), lambda j, k: (0, j)),                 # beta
    ]
    if has_drop:
        # inverted-dropout keep/scale mask, reproducible & tile-independent
        keep = jax.random.bernoulli(jax.random.PRNGKey(seed),
                                    1.0 - float(drop_rate), (B, f_out_p))
        dmask = keep.astype(jnp.float32) * (1.0 / (1.0 - float(drop_rate)))
        args.append(dmask)
        in_specs.append(pl.BlockSpec((B, n_tile), lambda j, k: (0, j)))

    scratch_shapes = [pltpu.VMEM((B, n_tile), jnp.float32)] if has_scratch else []

    kernel = functools.partial(
        _fc_bn_relu_kernel,
        eps=float(eps), inv_batch=1.0 / B, k_tile=k_tile,
        x_resident=x_resident, has_drop=has_drop, has_scratch=has_scratch)

    out = pl.pallas_call(
        kernel,
        out_shape=jax.ShapeDtypeStruct((B, f_out_p), out_dtype),
        grid_spec=pltpu.PrefetchScalarGridSpec(
            num_scalar_prefetch=0,
            grid=(n_j, n_k),                    # (F_out tiles, F_in reduction)
            in_specs=in_specs,
            out_specs=pl.BlockSpec((B, n_tile), lambda j, k: (0, j)),
            scratch_shapes=scratch_shapes),
        compiler_params=pltpu.CompilerParams(
            dimension_semantics=("parallel", "arbitrary"),
            vmem_limit_bytes=vmem_limit_bytes),
    )(*args)

    if f_out_p != f_out:
        out = out[:, :f_out]
    return out


def _reference(x, w, b, gamma, beta, eps=1e-5):
    y = x @ w.T + b
    mean = y.mean(axis=0, keepdims=True)
    var = ((y - mean) ** 2).mean(axis=0, keepdims=True)
    z = (y - mean) / jnp.sqrt(var + eps) * gamma + beta
    return jnp.maximum(z, 0.0)


if __name__ == "__main__":
    B, F_IN, F_OUT = 8, 32, 64

    key = jax.random.PRNGKey(0)
    kx, kw, kb = jax.random.split(key, 3)

    x = jax.random.normal(kx, (B, F_IN), dtype=jnp.float32)

    # PyTorch nn.Linear default init: U(-1/sqrt(fan_in), 1/sqrt(fan_in))
    bound = 1.0 / (F_IN ** 0.5)
    w = jax.random.uniform(kw, (F_OUT, F_IN), jnp.float32, -bound, bound)
    b = jax.random.uniform(kb, (F_OUT,), jnp.float32, -bound, bound)

    # PyTorch BatchNorm1d default init: weight=1, bias=0
    gamma = jnp.ones((F_OUT,), jnp.float32)
    beta = jnp.zeros((F_OUT,), jnp.float32)

    ref = _reference(x, w, b, gamma, beta)

    # --- f32 path, no dropout: exact check vs reference ---------------------
    out = fully_connected_block(x, w, b, gamma, beta, eps=1e-5, drop_rate=0.0)
    out = jax.block_until_ready(out)
    assert out.shape == (B, F_OUT)
    assert jnp.allclose(out, ref, rtol=1e-5, atol=1e-5), "f32 mismatch vs reference"

    # --- bf16-MXU path (f32 accumulate + f32 BN/ReLU): loose check ----------
    out_bf16 = fully_connected_block(x, w, b, gamma, beta, eps=1e-5,
                                     drop_rate=0.0, mxu_dtype=jnp.bfloat16)
    out_bf16 = jax.block_until_ready(out_bf16)
    assert out_bf16.shape == (B, F_OUT)
    assert jnp.allclose(out_bf16, ref, rtol=0.1, atol=0.2), "bf16 mismatch vs reference"

    # --- dropout path: kept elements must equal ref / (1 - p), rest zero ----
    p = 0.3
    out_drop = fully_connected_block(x, w, b, gamma, beta, eps=1e-5,
                                     drop_rate=p, seed=123)
    out_drop = jax.block_until_ready(out_drop)
    assert out_drop.shape == (B, F_OUT)
    assert bool(jnp.all(jnp.isfinite(out_drop)))
    ok = (out_drop == 0.0) | jnp.isclose(out_drop, ref / (1.0 - p),
                                         rtol=1e-5, atol=1e-5)
    assert bool(jnp.all(ok)), "dropout output is not {0, ref/(1-p)}"

    print("KERNEL_OK")
</pallas_src>

<mosaic_0001>
module attributes {stable_mosaic.version = 11 : i64} {
  func.func @_fc_bn_relu_kernel(%arg0: i32, %arg1: i32, %arg2: memref<8x128xf32, #tpu.memory_space<vmem>>, %arg3: memref<128x128xf32, #tpu.memory_space<vmem>>, %arg4: memref<1x128xf32, #tpu.memory_space<vmem>>, %arg5: memref<1x128xf32, #tpu.memory_space<vmem>>, %arg6: memref<8x128xf32, #tpu.memory_space<vmem>>) attributes {dimension_semantics = [#tpu.dimension_semantics<parallel>, #tpu.dimension_semantics<arbitrary>], iteration_bounds = array<i64: 1, 1>, scalar_prefetch = 0 : i64, scratch_operands = 0 : i64, tpu.core_type = #tpu.core_type<tc>, window_params = [{pipeline_mode = #tpu.pipeline_mode<synchronous>, transform_indices = @transform_0, window_bounds = array<i64: 8, 128>}, {transform_indices = @transform_1, window_bounds = array<i64: 128, 128>}, {transform_indices = @transform_2, window_bounds = array<i64: 1, 128>}, {transform_indices = @transform_3, window_bounds = array<i64: 1, 128>}, {transform_indices = @transform_4, window_bounds = array<i64: 8, 128>}]} {
    %c0_i32 = arith.constant 0 : i32
    %0 = arith.cmpi eq, %arg1, %c0_i32 : i32
    %1 = arith.extui %0 : i1 to i32
    %c0_i32_0 = arith.constant 0 : i32
    %2 = arith.cmpi ne, %1, %c0_i32_0 : i32
    scf.if %2 {
      %cst_9 = arith.constant 0.000000e+00 : f32
      %14 = vector.broadcast %cst_9 : f32 to vector<8x128xf32>
      %c0_10 = arith.constant 0 : index
      %c0_11 = arith.constant 0 : index
      %15 = vector.load %arg6[%c0_10, %c0_11] : memref<8x128xf32, #tpu.memory_space<vmem>>, vector<8x128xf32>
      tpu.vector_store %arg6[%c0_10, %c0_11], %14 {strides = array<i32>} : memref<8x128xf32, #tpu.memory_space<vmem>>, vector<8x128xf32>,
    } else {
    }
    %c128_i32 = arith.constant 128 : i32
    %3 = arith.muli %arg1, %c128_i32 : i32
    %c0 = arith.constant 0 : index
    %4 = arith.index_cast %3 : i32 to index
    %5 = vector.load %arg2[%c0, %4] : memref<8x128xf32, #tpu.memory_space<vmem>>, vector<8x128xf32>
    %c0_1 = arith.constant 0 : index
    %c0_2 = arith.constant 0 : index
    %6 = vector.load %arg6[%c0_1, %c0_2] : memref<8x128xf32, #tpu.memory_space<vmem>>, vector<8x128xf32>
    %c0_3 = arith.constant 0 : index
    %c0_4 = arith.constant 0 : index
    %7 = vector.load %arg3[%c0_3, %c0_4] : memref<128x128xf32, #tpu.memory_space<vmem>>, vector<128x128xf32>
    %cst = arith.constant dense<0.000000e+00> : vector<8x128xf32>
    %8 = tpu.matmul %5, %7, %cst {dimension_numbers = #tpu.dot_dimension_numbers<[1], [0], [0], [1], [0, 0, 1, 1], [], []>} : vector<8x128xf32>, vector<128x128xf32>, vector<8x128xf32> -> vector<8x128xf32>
    %9 = arith.addf %6, %8 : vector<8x128xf32>
    %c0_5 = arith.constant 0 : index
    %c0_6 = arith.constant 0 : index
    %10 = vector.load %arg6[%c0_5, %c0_6] : memref<8x128xf32, #tpu.memory_space<vmem>>, vector<8x128xf32>
    tpu.vector_store %arg6[%c0_5, %c0_6], %9 {strides = array<i32>} : memref<8x128xf32, #tpu.memory_space<vmem>>, vector<8x128xf32>,
    %c0_i32_7 = arith.constant 0 : i32
    %11 = arith.cmpi eq, %arg1, %c0_i32_7 : i32
    %12 = arith.extui %11 : i1 to i32
    %c0_i32_8 = arith.constant 0 : i32
    %13 = arith.cmpi ne, %12, %c0_i32_8 : i32
    scf.if %13 {
      %c0_9 = arith.constant 0 : index
      %c0_10 = arith.constant 0 : index
      %14 = vector.load %arg6[%c0_9, %c0_10] : memref<8x128xf32, #tpu.memory_space<vmem>>, vector<8x128xf32>
      %cst_11 = arith.constant dense<0.000000e+00> : vector<128xf32>
      %15 = vector.multi_reduction <add>, %14, %cst_11 [0] : vector<8x128xf32> to vector<128xf32>
      %16 = vector.shape_cast %15 : vector<128xf32> to vector<1x128xf32>
      %cst_12 = arith.constant 1.250000e-01 : f32
      %17 = vector.broadcast %cst_12 : f32 to vector<1x128xf32>
      %18 = arith.mulf %16, %17 : vector<1x128xf32>
      %19 = vector.broadcast %18 : vector<1x128xf32> to vector<8x128xf32>
      %20 = arith.subf %14, %19 : vector<8x128xf32>
      %21 = arith.mulf %20, %20 : vector<8x128xf32>
      %cst_13 = arith.constant dense<0.000000e+00> : vector<128xf32>
      %22 = vector.multi_reduction <add>, %21, %cst_13 [0] : vector<8x128xf32> to vector<128xf32>
      %23 = vector.shape_cast %22 : vector<128xf32> to vector<1x128xf32>
      %cst_14 = arith.constant 1.250000e-01 : f32
      %24 = vector.broadcast %cst_14 : f32 to vector<1x128xf32>
      %25 = arith.mulf %23, %24 : vector<1x128xf32>
      %c0_15 = arith.constant 0 : index
      %c0_16 = arith.constant 0 : index
      %26 = vector.load %arg4[%c0_15, %c0_16] : memref<1x128xf32, #tpu.memory_space<vmem>>, vector<1x128xf32>
      %cst_17 = arith.constant 9.99999974E-6 : f32
      %27 = vector.broadcast %cst_17 : f32 to vector<1x128xf32>
      %28 = arith.addf %25, %27 : vector<1x128xf32>
      %29 = math.rsqrt %28 : vector<1x128xf32>
      %30 = arith.mulf %26, %29 : vector<1x128xf32>
      %31 = vector.broadcast %30 : vector<1x128xf32> to vector<8x128xf32>
      %32 = arith.mulf %20, %31 : vector<8x128xf32>
      %c0_18 = arith.constant 0 : index
      %c0_19 = arith.constant 0 : index
      %33 = vector.load %arg5[%c0_18, %c0_19] : memref<1x128xf32, #tpu.memory_space<vmem>>, vector<1x128xf32>
      %34 = vector.broadcast %33 : vector<1x128xf32> to vector<8x128xf32>
      %35 = arith.addf %32, %34 : vector<8x128xf32>
      %cst_20 = arith.constant 0.000000e+00 : f32
      %36 = vector.broadcast %cst_20 : f32 to vector<8x128xf32>
      %37 = arith.maximumf %35, %36 : vector<8x128xf32>
      %c0_21 = arith.constant 0 : index
      %c0_22 = arith.constant 0 : index
      %38 = vector.load %arg6[%c0_21, %c0_22] : memref<8x128xf32, #tpu.memory_space<vmem>>, vector<8x128xf32>
      tpu.vector_store %arg6[%c0_21, %c0_22], %37 {strides = array<i32>} : memref<8x128xf32, #tpu.memory_space<vmem>>, vector<8x128xf32>,
    } else {
    }
    return
  }
  func.func @transform_0(%arg0: i32, %arg1: i32) -> (i32, i32) {
    %c0_i32 = arith.constant 0 : i32
    %c0_i32_0 = arith.constant 0 : i32
    %c0_i32_1 = arith.constant 0 : i32
    return %c0_i32, %c0_i32_0 : i32, i32
  }
  func.func @transform_1(%arg0: i32, %arg1: i32) -> (i32, i32) {
    %c0_i32 = arith.constant 0 : i32
    return %arg1, %arg0 : i32, i32
  }
  func.func @transform_2(%arg0: i32, %arg1: i32) -> (i32, i32) {
    %c0_i32 = arith.constant 0 : i32
    %c0_i32_0 = arith.constant 0 : i32
    return %c0_i32, %arg0 : i32, i32
  }
  func.func @transform_3(%arg0: i32, %arg1: i32) -> (i32, i32) {
    %c0_i32 = arith.constant 0 : i32
    %c0_i32_0 = arith.constant 0 : i32
    return %c0_i32, %arg0 : i32, i32
  }
  func.func @transform_4(%arg0: i32, %arg1: i32) -> (i32, i32) {
    %c0_i32 = arith.constant 0 : i32
    %c0_i32_0 = arith.constant 0 : i32
    return %c0_i32, %arg0 : i32, i32
  }
}

</mosaic_0001>

<bundles_post_ra>
// kernel: tpu_custom_call.1
= control target key start
LH: loop header
LB: loop body
LE: loop exit
PB: predicated region body
PF: predicated region fallthrough
CT: control target
= control target key end

     0   :  { %9 = vsyncpa [#allocation3], 0  ;;  %s442_s0 = inlined_call_operand.hbm [shape: f32[8,128], index: 0, kind: input, shape index: {}]   ;;  %s443_s1 = inlined_call_operand.hbm [shape: f32[128,128], index: 1, kind: input, shape index: {}]   ;;  %s444_s2 = inlined_call_operand.vmem [shape: f32[1,128], index: 2, kind: input, shape index: {}]   ;;  %s445_s3 = inlined_call_operand.vmem [shape: f32[1,128], index: 3, kind: input, shape index: {}]   ;;  %s446_s4 = inlined_call_operand.hbm [shape: f32[8,128], index: 4, kind: output, shape index: {}]  }
   0x1   :  { %10 = vsyncpa [#allocation6], 0 }
   0x2   :  { %11 = vsyncpa [#allocation4], 0  ;;  %s360_s15 = smov [#allocation2]   ;;  %s361_s17 = smov [#allocation5]  }
   0x3   :  { %s18_s16 = sshll.u32 %s360_s15, 4  ;;  %s27_s18 = sshll.u32 %s361_s17, 4  ;;  %s19_s16 = int_to_ptr.vmem [resolvable:$true] %s18_s16  ;;  %s393_s18 = int_to_ptr.vmem [resolvable:$true] %s27_s18 }
   0x4   :  { %s288_s21 = scalar_lea.hbm %s442_s0, 128 }
   0x5   :  { %p289_p0 = scmp.ne.s32.totalorder %s442_s0, %s288_s21  ;;  %p292_p1 = scmp.lt.u32.totalorder %s288_s21, %s442_s0 }
   0x7   :  { %p294_p2 = pnand %p292_p1, %p289_p0 }
   0x9   :  { %297 = shalt.err (!%p294_p2)
}
   0xa   :  { %s298_s26 = scalar_lea.vmem %s19_s16, 128  ;;  %p303_p4 = scmp.lt.s32.totalorder %s19_s16, %s19_s16 }
   0xb   :  { %p299_p3 = scmp.ne.s32.totalorder %s19_s16, %s298_s26  ;;  %p304_p5 = scmp.lt.s32.totalorder %s298_s26, %s298_s26 }
   0xd   :  { %p305_p6 = por %p304_p5, %p303_p4 }
   0xf   :  { %p306_p7 = pnand %p305_p6, %p299_p3 }
  0x11   :  { %309 = shalt.err (!%p306_p7)
}
  0x12   :  { %21 = dma.hbm_to_vmem [thread:$0]  %s442_s0, 128, %s19_s16, [#allocation3]  }
  0x13   :  { %s310_s5 = scalar_lea.hbm %s443_s1, 2048 }
  0x14   :  { %p311_p8 = scmp.ne.s32.totalorder %s443_s1, %s310_s5  ;;  %p314_p9 = scmp.lt.u32.totalorder %s310_s5, %s443_s1 }
  0x16   :  { %p316_p10 = pnand %p314_p9, %p311_p8 }
  0x18   :  { %319 = shalt.err (!%p316_p10)
}
  0x19   :  { %s320_s10 = scalar_lea.vmem %s393_s18, 2048  ;;  %p325_p12 = scmp.lt.s32.totalorder %s393_s18, %s393_s18 }
  0x1a   :  { %p321_p11 = scmp.ne.s32.totalorder %s393_s18, %s320_s10  ;;  %p326_p13 = scmp.lt.s32.totalorder %s320_s10, %s320_s10 }
  0x1c   :  { %p327_p0 = por %p326_p13, %p325_p12 }
  0x1e   :  { %p328_p1 = pnand %p327_p0, %p321_p11 }
  0x20   :  { %331 = shalt.err (!%p328_p1)
}
  0x21   :  { %s362_s0 = smov 128   ;;  %s363_s11 = smov 8  }
  0x22   :  { %33 = dma.hbm_to_vmem [thread:$0]  %s443_s1, 2048, %s393_s18, [#allocation6], %s362_s0, %s362_s0, %s363_s11  }
  0x23   :  { %354 = dma.done.wait [#allocation3], 128  }
  0x24   :  { %355 = vsyncadd [#allocation3], 4294967168 }
  0x25   :  { %356 = dma.done.wait [#allocation6], 2048  }
  0x26   :  { %357 = vsyncadd [#allocation6], 4294965248  ;;  %v364_v0 = vmov 0.0|0.0   ;;  %vm365_vm0 = vmmov 0   ;;  %v366_v1 = vmov 0.0   ;;  %v55_v2 = vld [vmem:[#allocation5] sm:$0xff]  ;;  %v168_v46 = vlaneseq }
  0x27   :  { %254 = vmatprep.subr.bf16.mxu0 %v364_v0  ;;  %251 = vmatprep.mubr.msk.f32.mxu0 %vm365_vm0, %v366_v1  ;;  %v56_v3 = vld [vmem:[#allocation5 + $0x8] sm:$0xff]  ;;  %v57_v4 = vld [vmem:[#allocation5 + $0x10] sm:$0xff]  ;;  %v58_v6 = vld [vmem:[#allocation5 + $0x18] sm:$0xff]  ;;  %s367_s17 = smov [#allocation7]  }
  0x28   :  { %v255_v5 = vpack.c.bf16 %v56_v3, %v55_v2  ;;  %v258_v7 = vpack.c.bf16 %v58_v6, %v57_v4  ;;  %v59_v8 = vld [vmem:[#allocation5 + $0x20] sm:$0xff]  ;;  %v60_v9 = vld [vmem:[#allocation5 + $0x28] sm:$0xff]  ;;  %v61_v11 = vld [vmem:[#allocation5 + $0x30] sm:$0xff]  ;;  %v169_v47 = vshrl.u32 %v168_v46, 7  ;;  %s190_s18 = sshll.u32 %s367_s17, 4  ;;  %s191_s18 = int_to_ptr.vmem [resolvable:$true] %s190_s18 }
  0x29   :  { %v261_v10 = vpack.c.bf16 %v60_v9, %v59_v8  ;;  %v62_v12 = vld [vmem:[#allocation5 + $0x38] sm:$0xff]  ;;  %v63_v14 = vld [vmem:[#allocation5 + $0x40] sm:$0xff]  ;;  %v64_v15 = vld [vmem:[#allocation5 + $0x48] sm:$0xff]  ;;  %s332_s19 = scalar_lea.vmem %s191_s18, 128  ;;  %p337_p3 = scmp.lt.s32.totalorder %s191_s18, %s191_s18 }
  0x2a   :  { %256 = vmatpush3.bf16.msra.mxu0 %v255_v5  ;;  %v264_v13 = vpack.c.bf16 %v62_v12, %v61_v11  ;;  %v267_v16 = vpack.c.bf16 %v64_v15, %v63_v14  ;;  %v65_v17 = vld [vmem:[#allocation5 + $0x50] sm:$0xff]  ;;  %v66_v18 = vld [vmem:[#allocation5 + $0x58] sm:$0xff]  ;;  %v67_v20 = vld [vmem:[#allocation5 + $0x60] sm:$0xff]  ;;  %v170_v49 = vsub.s32 0, %v169_v47  ;;  %p333_p2 = scmp.ne.s32.totalorder %s191_s18, %s332_s19  ;;  %p338_p4 = scmp.lt.s32.totalorder %s332_s19, %s332_s19 }
  0x2b   :  { %257 = vmatprep.subr.bf16.mxu0 %v364_v0  ;;  %v270_v19 = vpack.c.bf16 %v66_v18, %v65_v17  ;;  %v68_v21 = vld [vmem:[#allocation5 + $0x68] sm:$0xff]  ;;  %v69_v23 = vld [vmem:[#allocation5 + $0x70] sm:$0xff]  ;;  %v70_v24 = vld [vmem:[#allocation5 + $0x78] sm:$0xff] }
  0x2c   :  { %v273_v22 = vpack.c.bf16 %v68_v21, %v67_v20  ;;  %v276_v25 = vpack.c.bf16 %v70_v24, %v69_v23  ;;  %v53_v26 = vld [vmem:[#allocation2] sm:$0xff]  ;;  %p339_p5 = por %p338_p4, %p337_p3 }
  0x2d   :  { %v163_v48 = vld [vmem:[%s444_s2] sm:$0x1] }
  0x2e   :  { %259 = vmatpush3.bf16.msra.mxu0 %v258_v7  ;;  %v201_v53 = vld [vmem:[%s445_s3] ss:$0 sm:$0xff]  ;;  %p340_p6 = pnand %p339_p5, %p333_p2 }
  0x2f   :  { %260 = vmatprep.subr.bf16.mxu0 %v364_v0 }
  0x32   :  { %262 = vmatpush3.bf16.msra.mxu0 %v261_v10 }
  0x33   :  { %263 = vmatprep.subr.bf16.mxu0 %v364_v0 }
  0x36   :  { %265 = vmatpush3.bf16.msra.mxu0 %v264_v13 }
  0x37   :  { %266 = vmatprep.subr.bf16.mxu0 %v364_v0 }
  0x3a   :  { %268 = vmatpush3.bf16.msra.mxu0 %v267_v16 }
  0x3b   :  { %269 = vmatprep.subr.bf16.mxu0 %v364_v0 }
  0x3e   :  { %271 = vmatpush3.bf16.msra.mxu0 %v270_v19 }
  0x3f   :  { %272 = vmatprep.subr.bf16.mxu0 %v364_v0 }
  0x42   :  { %274 = vmatpush3.bf16.msra.mxu0 %v273_v22 }
  0x43   :  { %275 = vmatprep.subr.bf16.mxu0 %v364_v0 }
  0x46   :  { %277 = vmatpush3.bf16.msra.mxu0 %v276_v25 }
  0x49   :  { %252 = vmatmul.mubr.f32.vlgmr.msra.gmra.mrb[0].mxu0 %v53_v26 }
 0x11c   :  { %v137_v27 = vpop.f32.mrb[0].mxu0 }
 0x11d   :  { %v253_v28 = vpop.f32.mrb[1].mxu0  ;;  %v147_v29 = vrot.slane %v137_v27, 4 }
 0x11f   :  { %v148_v30 = vadd.f32 %v147_v29, %v137_v27 }
 0x121   :  { %v149_v31 = vrot.slane %v148_v30, 2 }
 0x123   :  { %v150_v32 = vadd.f32 %v149_v31, %v148_v30 }
 0x125   :  { %v151_v33 = vrot.slane %v150_v32, 1 }
 0x127   :  { %v152_v34 = vadd.f32 %v151_v33, %v150_v32 }
 0x129   :  { %v153_v35 = vmul.f32 0.125, %v152_v34 }
 0x12b   :  { %v154_v36 = vsub.f32 %v137_v27, %v153_v35 }
 0x12d   :  { %v155_v37 = vmul.f32 %v154_v36, %v154_v36 }
 0x12f   :  { %v156_v38 = vrot.slane %v155_v37, 4 }
 0x131   :  { %v157_v39 = vadd.f32 %v156_v38, %v155_v37 }
 0x133   :  { %v158_v40 = vrot.slane %v157_v39, 2 }
 0x135   :  { %v159_v41 = vadd.f32 %v158_v40, %v157_v39 }
 0x137   :  { %v160_v42 = vrot.slane %v159_v41, 1 }
 0x139   :  { %v161_v43 = vadd.f32 %v160_v42, %v159_v41 }
 0x13b   :  { %v162_v44 = vmul.f32 0.125, %v161_v43 }
 0x13d   :  { %v164_v45 = vadd.f32 1e-05, %v162_v44 }
 0x13f   :  { %286 = vrsqrt.f32 %v164_v45 }
 0x149   :  { %v287_v50 = vpop.eup %286 }
 0x14a   :  { %v166_v51 = vmul.f32 %v287_v50, %v163_v48 }
 0x14c   :  { %v171_v52 = vrot.slane %v166_v51, %v170_v49 }
 0x14e   :  { %v173_v54 = vmul.f32 %v171_v52, %v154_v36 }
 0x150   :  { %v181_v55 = vadd.f32 %v201_v53, %v173_v54 }
 0x152   :  { %v182_v56 = vmax.f32 %v181_v55, 0.0 }
 0x154   :  { %183 = vst [vmem:[#allocation7] sm:$0xff] %v182_v56 }
 0x155   :  { %343 = shalt.err (!%p340_p6)
}
 0x156   :  { %s344_s21 = scalar_lea.hbm %s446_s4, 128 }
 0x157   :  { %p345_p7 = scmp.ne.s32.totalorder %s446_s4, %s344_s21  ;;  %p348_p8 = scmp.lt.u32.totalorder %s344_s21, %s446_s4 }
 0x159   :  { %p350_p9 = pnand %p348_p8, %p345_p7 }
 0x15b   :  { %353 = shalt.err (!%p350_p9)
}
 0x15c   :  { %193 = dma.vmem_to_hbm [thread:$0]  %s191_s18, 128, %s446_s4, [#allocation4]  }
 0x15d   :  { %358 = dma.done.wait [#allocation4], 128  }
 0x15e   :  { %359 = vsyncadd [#allocation4], 4294967168 }
 0x15f   :  { %197 = vsyncpa [#allocation3], 1 }
 0x160   :  { %198 = vsyncpa [#allocation6], 1 }
 0x161   :  { %199 = vsyncpa [#allocation4], 1 }

</bundles_post_ra>
